<compile_context>
chip_gen: v7x
topology: tpu7x:2x2x1
jax: 0.10.0
libtpu: 0.0.40
codegen_flags: <defaults>
</compile_context>

<pallas_src>
import jax
import jax.numpy as jnp
from jax import lax
from jax.experimental import pallas as pl
from jax.experimental.pallas import tpu as pltpu


def _round_up(a, b):
    return ((a + b - 1) // b) * b


def _frozen_bn_kernel(x_ref, par_ref, o_ref):
    # x_ref / o_ref: (c_tile, lane_tile)  (batch dim squeezed by BlockSpec)
    # par_ref: (2, c_tile, 1) with [0] = scale, [1] = shift (both f32)
    #
    # NOTE: ragged boundary blocks (C or H*W not multiples of the tile) read
    # stale tail data from VMEM/HBM.  That is safe ONLY because this kernel is
    # purely elementwise and the partial output DMA writes back just the valid
    # region — do not inherit this assumption into any reduction-style edit.
    x = x_ref[...].astype(jnp.float32)
    y = x * par_ref[0] + par_ref[1]
    o_ref[...] = y.astype(o_ref.dtype)


def _tpu_vmem_capacity_bytes():
    try:
        return int(pltpu.get_tpu_info().vmem_capacity_bytes)
    except Exception:
        return 128 * 1024 * 1024  # v5e / v6e default


def frozen_batch_norm_2d(
    x,
    weight,
    bias,
    running_mean,
    running_var,
    *,
    eps=1e-5,
    target_block_bytes=None,
):
    """x: (N, C, H, W). weight/bias/running_mean/running_var: (C,)."""
    if not jnp.issubdtype(x.dtype, jnp.floating):
        raise TypeError("frozen_batch_norm_2d expects a floating-point activation dtype")

    N, C, H, W = x.shape
    HW = H * W
    dtype_bytes = jnp.dtype(x.dtype).itemsize

    # ---- fold the four frozen buffers into one f32 (scale, shift) pair: O(C) ----
    w32 = weight.astype(jnp.float32)
    b32 = bias.astype(jnp.float32)
    rm32 = running_mean.astype(jnp.float32)
    rv32 = running_var.astype(jnp.float32)
    scale = w32 * lax.rsqrt(rv32 + jnp.float32(eps))
    shift = b32 - rm32 * scale

    # ---- generation-aware block sizing ------------------------------------
    vmem_cap = _tpu_vmem_capacity_bytes()
    if target_block_bytes is None:
        # v7x (64 MiB VMEM/TC, ~3.2 TB/s): 8 MiB blocks amortize the ~0.35 us
        # per-grid-step overhead; v5e/v6e (128 MiB VMEM) are near roofline at 4 MiB.
        if vmem_cap <= 64 * 1024 * 1024:
            target_block_bytes = 8 * 1024 * 1024
        else:
            target_block_bytes = 4 * 1024 * 1024

    sublane = {2: 16, 1: 32}.get(dtype_bytes, 8)
    lane_tile = min(_round_up(HW, 128), 8192)
    rows_target = max(sublane, target_block_bytes // (lane_tile * dtype_bytes))
    c_tile = min(_round_up(C, sublane), (rows_target // sublane) * sublane)
    c_tile = max(c_tile, sublane)

    # ---- view x as (N, C, H*W); NO padding/slicing of activations ----------
    x3 = x.reshape(N, C, HW)

    # Fused params: one (2, Cp, 1) array -> single BlockSpec / one DMA per step.
    # Padding the params is O(C) and keeps boundary-block garbage deterministic.
    Cp = _round_up(C, c_tile)
    params = jnp.stack([scale, shift], axis=0).reshape(2, C, 1)
    if Cp != C:
        params = jnp.pad(params, ((0, 0), (0, Cp - C), (0, 0)))

    grid = (N, pl.cdiv(C, c_tile), pl.cdiv(HW, lane_tile))

    x_spec = pl.BlockSpec((None, c_tile, lane_tile), lambda n, c, j: (n, c, j))
    par_spec = pl.BlockSpec((2, c_tile, 1), lambda n, c, j: (0, c, 0))

    block_bytes = c_tile * lane_tile * dtype_bytes
    # Real footprint: double-buffered in + out = 4 blocks, plus params/headroom;
    # cap at ~65% of this generation's physical VMEM (64 MiB v7x, 128 MiB v5e/v6e).
    vmem_limit_bytes = min(
        int(0.65 * vmem_cap),
        max(32 * 1024 * 1024, 4 * block_bytes + (2 << 20)),
    )

    cost = pl.CostEstimate(
        flops=2 * N * C * HW,
        transcendentals=0,
        bytes_accessed=2 * N * C * HW * dtype_bytes + 2 * Cp * 4,
    )

    out3 = pl.pallas_call(
        _frozen_bn_kernel,
        out_shape=jax.ShapeDtypeStruct((N, C, HW), x.dtype),
        grid_spec=pltpu.PrefetchScalarGridSpec(
            num_scalar_prefetch=0,
            grid=grid,
            in_specs=[x_spec, par_spec],
            out_specs=x_spec,
        ),
        compiler_params=pltpu.CompilerParams(
            # Pure elementwise, unique output block per grid point -> all axes
            # parallel so v7x can shard across both TensorCores.
            dimension_semantics=("parallel", "parallel", "parallel"),
            vmem_limit_bytes=vmem_limit_bytes,
        ),
        cost_estimate=cost,
    )(x3, params)

    return out3.reshape(N, C, H, W)


def _reference(x, weight, bias, running_mean, running_var, eps=1e-5):
    w = weight.reshape(1, -1, 1, 1)
    b = bias.reshape(1, -1, 1, 1)
    rv = running_var.reshape(1, -1, 1, 1)
    rm = running_mean.reshape(1, -1, 1, 1)
    scale = w * lax.rsqrt(rv + eps)
    bias_ = b - rm * scale
    return x * scale + bias_


if __name__ == "__main__":
    key = jax.random.PRNGKey(0)

    def make_inputs(key, N, C, H, W):
        kx, kw, kb, km, kv = jax.random.split(key, 5)
        x = jax.random.normal(kx, (N, C, H, W), dtype=jnp.float32)
        weight = jnp.ones((C,), jnp.float32) + 0.1 * jax.random.normal(kw, (C,), jnp.float32)
        bias = 0.1 * jax.random.normal(kb, (C,), jnp.float32)
        running_mean = 0.1 * jax.random.normal(km, (C,), jnp.float32)
        running_var = jnp.ones((C,), jnp.float32) + 0.05 * jnp.abs(
            jax.random.normal(kv, (C,), jnp.float32)
        )
        return x, weight, bias, running_mean, running_var

    k1, k2 = jax.random.split(key)

    # Small shape consistent with the module (N=2, C=4, spatial 16x16).
    x, w, b, rm, rv = make_inputs(k1, 2, 4, 16, 16)
    out = jax.block_until_ready(frozen_batch_norm_2d(x, w, b, rm, rv))
    ref = _reference(x, w, b, rm, rv)
    assert out.shape == x.shape
    assert jnp.allclose(out, ref, atol=1e-5, rtol=1e-5)

    # Ragged shape: exercises the no-pad boundary-block path (C and H*W not
    # multiples of the tile sizes).
    x2, w2, b2, rm2, rv2 = make_inputs(k2, 1, 3, 5, 7)
    out2 = jax.block_until_ready(frozen_batch_norm_2d(x2, w2, b2, rm2, rv2))
    ref2 = _reference(x2, w2, b2, rm2, rv2)
    assert out2.shape == x2.shape
    assert jnp.allclose(out2, ref2, atol=1e-5, rtol=1e-5)

    print("KERNEL_OK")
</pallas_src>

<mosaic_0001>
module attributes {stable_mosaic.version = 11 : i64} {
  func.func @_frozen_bn_kernel(%arg0: i32, %arg1: i32, %arg2: i32, %arg3: memref<1x8x256xf32, #tpu.memory_space<vmem>>, %arg4: memref<2x8x1xf32, #tpu.memory_space<vmem>>, %arg5: memref<1x8x256xf32, #tpu.memory_space<vmem>>) attributes {dimension_semantics = [#tpu.dimension_semantics<parallel>, #tpu.dimension_semantics<parallel>, #tpu.dimension_semantics<parallel>], iteration_bounds = array<i64: 2, 1, 1>, scalar_prefetch = 0 : i64, scratch_operands = 0 : i64, tpu.core_type = #tpu.core_type<tc>, window_params = [{transform_indices = @transform_0, window_bounds = array<i64: 1, 8, 256>}, {transform_indices = @transform_1, window_bounds = array<i64: 2, 8, 1>}, {transform_indices = @transform_2, window_bounds = array<i64: 1, 8, 256>}]} {
    %c0 = arith.constant 0 : index
    %c0_0 = arith.constant 0 : index
    %c0_1 = arith.constant 0 : index
    %0 = vector.load %arg3[%c0, %c0_0, %c0_1] : memref<1x8x256xf32, #tpu.memory_space<vmem>>, vector<1x8x256xf32>
    %1 = vector.shape_cast %0 : vector<1x8x256xf32> to vector<8x256xf32>
    %c0_2 = arith.constant 0 : index
    %c0_3 = arith.constant 0 : index
    %c0_4 = arith.constant 0 : index
    %2 = vector.load %arg4[%c0_2, %c0_3, %c0_4] : memref<2x8x1xf32, #tpu.memory_space<vmem>>, vector<1x8x1xf32>
    %3 = vector.shape_cast %2 : vector<1x8x1xf32> to vector<8x1xf32>
    %4 = vector.broadcast %3 : vector<8x1xf32> to vector<8x256xf32>
    %5 = arith.mulf %1, %4 : vector<8x256xf32>
    %c1 = arith.constant 1 : index
    %c0_5 = arith.constant 0 : index
    %c0_6 = arith.constant 0 : index
    %6 = vector.load %arg4[%c1, %c0_5, %c0_6] : memref<2x8x1xf32, #tpu.memory_space<vmem>>, vector<1x8x1xf32>
    %7 = vector.shape_cast %6 : vector<1x8x1xf32> to vector<8x1xf32>
    %8 = vector.broadcast %7 : vector<8x1xf32> to vector<8x256xf32>
    %9 = arith.addf %5, %8 : vector<8x256xf32>
    %c0_7 = arith.constant 0 : index
    %c0_8 = arith.constant 0 : index
    %c0_9 = arith.constant 0 : index
    %10 = vector.load %arg5[%c0_7, %c0_8, %c0_9] : memref<1x8x256xf32, #tpu.memory_space<vmem>>, vector<1x8x256xf32>
    %11 = vector.shape_cast %10 : vector<1x8x256xf32> to vector<8x256xf32>
    %12 = vector.shape_cast %9 : vector<8x256xf32> to vector<1x8x256xf32>
    tpu.vector_store %arg5[%c0_7, %c0_8, %c0_9], %12 {strides = array<i32>} : memref<1x8x256xf32, #tpu.memory_space<vmem>>, vector<1x8x256xf32>,
    return
  }
  func.func @transform_0(%arg0: i32, %arg1: i32, %arg2: i32) -> (i32, i32, i32) {
    %c0_i32 = arith.constant 0 : i32
    return %arg0, %arg1, %arg2 : i32, i32, i32
  }
  func.func @transform_1(%arg0: i32, %arg1: i32, %arg2: i32) -> (i32, i32, i32) {
    %c0_i32 = arith.constant 0 : i32
    %c0_i32_0 = arith.constant 0 : i32
    %c0_i32_1 = arith.constant 0 : i32
    return %c0_i32, %arg1, %c0_i32_0 : i32, i32, i32
  }
  func.func @transform_2(%arg0: i32, %arg1: i32, %arg2: i32) -> (i32, i32, i32) {
    %c0_i32 = arith.constant 0 : i32
    return %arg0, %arg1, %arg2 : i32, i32, i32
  }
}

</mosaic_0001>

<bundles_post_ra>
// kernel: tpu_custom_call.1
= control target key start
LH: loop header
LB: loop body
LE: loop exit
PB: predicated region body
PF: predicated region fallthrough
CT: control target
= control target key end

     0   :  { %7 = vsyncpa [#allocation3], 0  ;;  %s707_s0 = inlined_call_operand.vmem [shape: f32[2,4,256], index: 0, kind: input, shape index: {}]   ;;  %s708_s1 = inlined_call_operand.vmem [shape: f32[2,8,1], index: 1, kind: input, shape index: {}]   ;;  %s709_s2 = inlined_call_operand.hbm [shape: f32[2,4,256], index: 2, kind: output, shape index: {}]  }
   0x1   :  { %9 = vsyncpa [#allocation3 + $0x1], 0  ;;  %s591_s9 = smov 0   ;;  %s593_s10 = smov 0  }
   0x2   :  { %s595_s11 = smov 0   ;;  %s597_s12 = smov 0  }
   0x3   :  { %s599_s13 = smov 0   ;;  %s601_s14 = smov 0  }
   0x4 LB: > { %s417_s15 = sadd.s32 4294967295, %s568_s14   ;;  %s418_s16 = sadd.s32 4294967294, %s568_s14   ;;  %s568_s14 = sphi %s601_s14, %s15_s14   ;;  %s564_s13 = sphi %s599_s13, %s716_s13   ;;  %s560_s12 = sphi %s597_s12, %s715_s12   ;;  %s556_s11 = sphi %s595_s11, %s714_s11   ;;  %s552_s10 = sphi %s593_s10, %s713_s10   ;;  %s548_s9 = sphi %s591_s9, %s712_s9  }
   0x5   : > { %s34_s17 = sadd.s32 1, %s564_s13  ;;  %s101_s18 = sadd.s32 1, %s556_s11 }
   0x6   : > { %p36_p0 = scmp.ge.s32.totalorder %s34_s17, 2  ;;  %p111_p1 = scmp.ne.s32.totalorder %s556_s11, %s552_s10 }
   0x7   : > { %p112_p2 = scmp.eq.s32.totalorder %s417_s15, 1  ;;  %p117_p3 = scmp.ne.s32.totalorder %s552_s10, %s548_s9 }
   0x8   : > { %s718_s17 = smov (%p36_p0, %s34_s17), 0  ;;  %p118_p5 = scmp.eq.s32.totalorder %s418_s16, 1 }
   0x9   : > { %p631_p4 = por %p112_p2, %p111_p1  ;;  %s94_s20 = ssub.s32 %s564_s13, %s718_s17 }
   0xa   : > { %p422_p6 = scmp.ge.s32.totalorder %s568_s14, 1  ;;  %p99_p7 = scmp.eq.s32.totalorder %s94_s20, 0 }
   0xb   : > { %p638_p8 = por %p118_p5, %p117_p3  ;;  %p168_p9 = scmp.lt.s32.totalorder %s568_s14, 3 }
   0xc   : > { %s644_s22 = scalar_select %p99_p7, %s556_s11, %s101_s18  }
   0xd   : > { %p169_p10 = pnand %p422_p6, %p168_p9 }
   0xe   : > { %v239_v0 = vld [vmem:[%s708_s1] sm:$0xff] (!%p169_p10)  ;;  %v570_v1 = vmov (!%p169_p10), 0   ;;  %v426_v2 = vld [vmem:[%s708_s1 + $0x8] sm:$0xff] (!%p169_p10)  ;;  %s203_s27 = sand.u32 (!%p169_p10), 1, %s552_s10   ;;  %p211_p11 = scmp.lt.s32.totalorder (!%p169_p10), %s560_s12, 1  ;;  %v247_v5 = vlaneseq (!%p169_p10) }
   0xf   : > { %172 = sbr.rel (%p169_p10) target bundleno = 178 (0xb2), region = 28  ;;  %493 = vset.pattern.permute.xlu0 (!%p169_p10), %v570_v1  ;;  %v571_v3 = vmov (!%p169_p10), 839922192   ;;  %v572_v6 = vmov (!%p169_p10), 1985246804   ;;  %s423_s5 = sshll.u32 (!%p169_p10), %s203_s27, 4 }
  0x10   : > { %242 = vperm.xlu0 (!%p169_p10), %493, %v239_v0   ;;  %v245_v4 = vunpack.c.l.s4 (!%p169_p10), %v571_v3  ;;  %v252_v7 = vunpack.c.l.s4 (!%p169_p10), %v572_v6  ;;  %v248_v9 = vshrl.u32 (!%p169_p10), %v247_v5, 7  ;;  %s205_s6 = scalar_lea.vmem (!%p169_p10), [#allocation2], %s423_s5  ;;  %s662_s7 = scalar_lea.sflag (!%p169_p10), [#allocation3], %s203_s27 }
  0x12   : > { %v246_v8 = vunpack.c.0.s8 (!%p169_p10), %v245_v4  ;;  %v253_v10 = vunpack.c.0.s8 (!%p169_p10), %v252_v7 }
  0x14   : > { %266 = vperm.xlu0 (!%p169_p10), %493, %v426_v2   ;;  %v249_v11 = vsub.s32 (!%p169_p10), %v246_v8, %v248_v9  ;;  %v256_v12 = vsub.s32 (!%p169_p10), %v253_v10, %v248_v9 }
  0x16   : > { %s212_s28 = scalar_select %p211_p11, %s560_s12, 1 }
  0x18   : > { %s432_s29 = sshll.u32 %s212_s28, 3 }
  0x19   : > { %s222_s4 = scalar_lea.vmem %s707_s0, %s432_s29 }
  0x1a   : > { %v237_v16 = vld [vmem:[%s222_s4] sm:$0xff]  ;;  %v238_v17 = vld [vmem:[%s222_s4 + $0x8] sm:$0xff] }
  0x8f   : > { %v243_v13 = vpop.permute.xlu0 %242 }
  0x90   : > { %v250_v14 = vrot.slane %v243_v13, %v249_v11  ;;  %v257_v15 = vrot.slane %v243_v13, %v256_v12 }
  0x92   : > { %v260_v19 = vmul.f32 %v250_v14, %v237_v16  ;;  %v261_v20 = vmul.f32 %v257_v15, %v238_v17  ;;  %295 = sbr.rel (!%p631_p4) target bundleno = 178 (0xb2), region = 32 }
  0x93   : > { %v267_v18 = vpop.permute.xlu0 %266 }
  0x94   : > { %v274_v21 = vrot.slane %v267_v18, %v249_v11  ;;  %v281_v22 = vrot.slane %v267_v18, %v256_v12 }
  0x96   : > { %v284_v23 = vadd.f32 %v274_v21, %v260_v19  ;;  %v285_v24 = vadd.f32 %v281_v22, %v261_v20 }
  0x98   : > { %286 = vst [vmem:[%s205_s6] sm:$0xff] %v284_v23  ;;  %287 = vst [vmem:[%s205_s6 + $0x8] sm:$0xff] %v285_v24 }
  0x99   : > { %303 = vsyncadd %s662_s7, 128  ;;  %s433_s8 = sshll.u32 %s560_s12, 7  ;;  %s312_s15 = sshll.u32 %s205_s6, 4  ;;  %s313_s15 = int_to_ptr.vmem [resolvable:$true] %s312_s15 }
  0x9a   : > { %s671_s20 = scalar_lea.hbm %s709_s2, %s433_s8  ;;  %s494_s23 = scalar_lea.vmem %s313_s15, 128 }
  0x9b   : > { %p495_p12 = scmp.ne.s32.totalorder %s313_s15, %s494_s23  ;;  %s573_s24 = smov [#allocation2]  }
  0x9c   : > { %s496_s25 = sshll.u32 %s573_s24, 4  ;;  %s497_s25 = int_to_ptr.vmem [resolvable:$false] %s496_s25 }
  0x9d   : > { %s498_s26 = scalar_lea.vmem %s497_s25, 512  ;;  %p499_p13 = scmp.lt.s32.totalorder %s313_s15, %s497_s25 }
  0x9e   : > { %p500_p0 = scmp.lt.s32.totalorder %s498_s26, %s494_s23 }
  0xa0   : > { %p501_p1 = por %p500_p0, %p499_p13 }
  0xa2   : > { %p502_p2 = pnand %p501_p1, %p495_p12 }
  0xa4   : > { %505 = shalt.err (!%p502_p2)
}
  0xa5   : > { %s506_s12 = scalar_lea.hbm %s671_s20, 128  ;;  %s508_s28 = scalar_lea.hbm %s709_s2, 256 }
  0xa6   : > { %p507_p3 = scmp.ne.s32.totalorder %s671_s20, %s506_s12  ;;  %p509_p4 = scmp.lt.u32.totalorder %s671_s20, %s709_s2 }
  0xa7   : > { %p510_p5 = scmp.lt.u32.totalorder %s508_s28, %s506_s12  ;;  %p512_p7 = scmp.lt.u32.totalorder %s506_s12, %s671_s20 }
  0xa9   : > { %p511_p6 = por %p510_p5, %p509_p4 }
  0xab   : > { %p513_p9 = por %p512_p7, %p511_p6 }
  0xad   : > { %p514_p10 = pnand %p513_p9, %p507_p3 }
  0xaf   : > { %517 = shalt.err (!%p514_p10)
}
  0xb0   : > { %s574_s3 = smov 128   ;;  %s575_s4 = smov 8  }
  0xb1   : > { %318 = dma.vmem_to_hbm [thread:$0]  %s313_s15, 128, %s671_s20, %s662_s7, %s574_s3, %s574_s3, %s575_s4  }
  0xb2 PF: > { %p439_p11 = scmp.ge.s32.totalorder %s568_s14, 2  ;;  %s327_s5 = sand.u32 1, %s548_s9  }
  0xb3   : > { %s328_s6 = scalar_lea.sflag [#allocation3], %s327_s5 }
  0xb4   : > { %p436_p12 = pnand %p439_p11, %p638_p8 }
  0xb6   : > { %543 = dma.done.wait (!%p436_p12), %s328_s6, 256  }
  0xb7   : > { %545 = vsyncadd (!%p436_p12), %s328_s6, 4294967040  ;;  %s15_s14 = sadd.s32 1, %s568_s14   ;;  %s712_s9 = smov %s552_s10 }
  0xb8   : > { %p12_p13 = scmp.ge.s32.totalorder %s15_s14, 4   ;;  %s713_s10 = smov %s556_s11 }
  0xb9   : > { %s714_s11 = smov %s644_s22  ;;  %s715_s12 = smov %s564_s13 }
  0xba   : > { %s716_s13 = smov %s718_s17  ;;  %14 = sbr.rel (!%p12_p13) target bundleno = 4 (0x4), region = 67 }
  0xc1   :  { %333 = vsyncpa [#allocation3], 1 }
  0xc2   :  { %335 = vsyncpa [#allocation3 + $0x1], 1 }

</bundles_post_ra>
